<compile_context>
chip_gen: v5e
topology: v5e:2x2
jax: 0.10.0
libtpu: 0.0.40
codegen_flags: <defaults>
</compile_context>

<pallas_src>
import jax
import jax.numpy as jnp
from jax.experimental import pallas as pl
from jax.experimental.pallas import tpu as pltpu


def _cdiv(a, b):
    return -(-a // b)


def _round_up(x, m):
    return _cdiv(x, m) * m


def _pad_dim(d):
    """Pad a feature dim to a lane-dense multiple of 128; prefer 256 alignment
    (full 256x256 MXU pass on v6e/v7x) when the extra padding is small."""
    p128 = _round_up(d, 128)
    p256 = _round_up(d, 256)
    if p256 != p128 and (p256 - d) <= max(d // 16, 0):
        return p256
    return p128


def _device_kind():
    try:
        return jax.devices()[0].device_kind.lower()
    except Exception:
        return ""


def _pick_tf(tf_target, d_ff_p):
    """Largest multiple-of-128 tile <= tf_target that divides d_ff_p."""
    t = min(max(128, (tf_target // 128) * 128), d_ff_p)
    while d_ff_p % t:
        t -= 128
    return t


def _vmem_bytes(tm, tf, d_model_p, out_bytes, cbytes):
    """Rough working-set estimate: double-buffered pipelined blocks + resident
    f32 accumulator + the internal (tm, tf) intermediate between matmuls."""
    x_io = 2 * tm * d_model_p * cbytes
    w1_io = 2 * d_model_p * tf * cbytes
    w2_io = 2 * tf * d_model_p * cbytes
    b_io = 2 * (tf + d_model_p) * 4
    out_io = 2 * tm * d_model_p * out_bytes
    acc = tm * d_model_p * 4
    h_tmp = tm * tf * (4 + cbytes)
    return x_io + w1_io + w2_io + b_io + out_io + acc + h_tmp


def ffn_kernel(x_ref, w1_ref, b1_ref, w2_ref, b2_ref, o_ref, acc_ref):
    """One (row-tile i, d_ff-tile k) step of y = ReLU(x@W1 + b1) @ W2 + b2."""
    k = pl.program_id(1)

    @pl.when(k == 0)
    def _init():
        acc_ref[...] = jnp.zeros_like(acc_ref)

    # MXU matmul #1 (bf16 operands, f32 accumulation). Cast back to the
    # compute dtype immediately so the live (tm, tf) intermediate is half the
    # size; bias add + ReLU stay in the compute dtype on the VPU.
    h = jnp.dot(x_ref[...], w1_ref[...], preferred_element_type=jnp.float32)
    h = h.astype(x_ref.dtype)
    h = jnp.maximum(h + b1_ref[...], 0.0)
    # TODO(synk): dropout omitted (inference/eval mode -> identity).

    # MXU matmul #2, accumulated in f32 across the d_ff tiles.
    acc_ref[...] += jnp.dot(h, w2_ref[...], preferred_element_type=jnp.float32)

    @pl.when(k == pl.num_programs(1) - 1)
    def _finalize():
        o_ref[...] = (acc_ref[...] + b2_ref[...]).astype(o_ref.dtype)


def prepare_ffn_params(w1, b1, w2, b2, *, compute_dtype=jnp.bfloat16):
    """One-time weight preparation (hoisted out of the per-call path).

    w1: (d_model, d_ff), b1: (d_ff,), w2: (d_ff, d_model), b2: (d_model,)
    i.e. y = relu(x @ w1 + b1) @ w2 + b2 (equivalent to PyTorch's x @ W.T with
    nn.Linear weights of shape (d_out, d_in)). Pads feature dims to lane-dense
    multiples of 128/256 and casts matmul operands (and b1) to the MXU compute
    dtype; b2 stays f32 for the f32 epilogue add.
    """
    d_model, d_ff = w1.shape
    d_model_p = _pad_dim(d_model)
    d_ff_p = _pad_dim(d_ff)
    w1_p = jnp.pad(w1, ((0, d_model_p - d_model),
                        (0, d_ff_p - d_ff))).astype(compute_dtype)
    w2_p = jnp.pad(w2, ((0, d_ff_p - d_ff),
                        (0, d_model_p - d_model))).astype(compute_dtype)
    b1_p = jnp.pad(b1, (0, d_ff_p - d_ff)).reshape(1, d_ff_p).astype(compute_dtype)
    b2_p = jnp.pad(b2, (0, d_model_p - d_model)).reshape(1, d_model_p).astype(jnp.float32)
    return {
        "w1": w1_p, "b1": b1_p, "w2": w2_p, "b2": b2_p,
        "d_model": d_model, "d_ff": d_ff, "compute_dtype": compute_dtype,
    }


def feedforward(x, params, *, tm=None, tf=None, vmem_budget_bytes=None):
    """x: (batch, seq, d_model) -> (batch, seq, d_model).

    `params` comes from prepare_ffn_params(); only the activations are padded
    and cast per call.
    """
    w1_p, b1_p = params["w1"], params["b1"]
    w2_p, b2_p = params["w2"], params["b2"]
    d_model = params["d_model"]
    compute_dtype = params["compute_dtype"]

    batch, seq, dm = x.shape
    assert dm == d_model, "x feature dim does not match prepared weights"
    out_dtype = x.dtype
    M = batch * seq
    d_model_p, d_ff_p = w1_p.shape

    kind = _device_kind()
    is_v5 = "v5" in kind
    is_v7 = "v7" in kind
    if tm is None:
        # v5e is roughly compute-bound already at tm~256; v6e/v7x need larger
        # row tiles to get past the HBM roofline knee on weight streaming.
        tm = 256 if is_v5 else 512
    if tf is None:
        tf = 512
    if vmem_budget_bytes is None:
        # v7x has 64 MiB physical VMEM; v5e/v6e have 128 MiB. Default to the
        # v7x-safe budget when the chip generation cannot be identified.
        vmem_budget_bytes = (100 << 20) if ("v5" in kind or "v6" in kind) else (56 << 20)
    num_tc = 2 if is_v7 else 1

    # Row tile: balance across ceil(M/tm) tiles (minimizes padded-row waste)
    # and use at least `num_tc` tiles so the "parallel" axis feeds both v7x
    # TensorCores when there are enough rows.
    row_align = 16
    n_row_tiles = max(_cdiv(M, tm), min(num_tc, max(M // row_align, 1)))
    tm_eff = _round_up(_cdiv(M, n_row_tiles), row_align)
    tf_eff = _pick_tf(tf, d_ff_p)

    # Shrink tiles (tf first, then tm) until the working set fits the budget.
    out_bytes = jnp.dtype(out_dtype).itemsize
    cbytes = jnp.dtype(compute_dtype).itemsize
    limit = int(0.85 * vmem_budget_bytes)
    while _vmem_bytes(tm_eff, tf_eff, d_model_p, out_bytes, cbytes) > limit and tf_eff > 128:
        tf_eff = _pick_tf(tf_eff // 2, d_ff_p)
    while _vmem_bytes(tm_eff, tf_eff, d_model_p, out_bytes, cbytes) > limit and tm_eff > row_align:
        tm_eff = max(row_align, _round_up(tm_eff // 2, row_align))
    # TODO(synk): for very large d_model (>= ~6-8K) the x/W1/W2 blocks and the
    # f32 accumulator still scale with d_model_p; an extra grid axis tiling
    # d_model would be needed to bound VMEM on v7x for such models.

    M_p = _round_up(M, tm_eff)

    # Per-call activation pad + cast only (weights were prepared once).
    x2 = jnp.pad(x.reshape(M, d_model),
                 ((0, M_p - M), (0, d_model_p - d_model))).astype(compute_dtype)

    grid = (M_p // tm_eff, d_ff_p // tf_eff)

    out = pl.pallas_call(
        ffn_kernel,
        out_shape=jax.ShapeDtypeStruct((M_p, d_model_p), out_dtype),
        grid_spec=pltpu.PrefetchScalarGridSpec(
            num_scalar_prefetch=0,
            grid=grid,
            in_specs=[
                pl.BlockSpec((tm_eff, d_model_p), lambda i, k: (i, 0)),   # x rows
                pl.BlockSpec((d_model_p, tf_eff), lambda i, k: (0, k)),   # W1 d_ff-tile
                pl.BlockSpec((1, tf_eff), lambda i, k: (0, k)),           # b1 d_ff-tile
                pl.BlockSpec((tf_eff, d_model_p), lambda i, k: (k, 0)),   # W2 d_ff-tile
                pl.BlockSpec((1, d_model_p), lambda i, k: (0, 0)),        # b2
            ],
            out_specs=pl.BlockSpec((tm_eff, d_model_p), lambda i, k: (i, 0)),
            scratch_shapes=[pltpu.VMEM((tm_eff, d_model_p), jnp.float32)],
        ),
        compiler_params=pltpu.CompilerParams(
            dimension_semantics=("parallel", "arbitrary"),
            vmem_limit_bytes=int(vmem_budget_bytes),
        ),
    )(x2, w1_p, b1_p, w2_p, b2_p)

    return out[:M, :d_model].reshape(batch, seq, d_model)


def feedforward_ref(x, w1, b1, w2, b2, compute_dtype=jnp.bfloat16):
    """Reference with the same dtype strategy as the kernel (bf16 matmuls with
    f32 accumulation, bf16 bias+ReLU, f32 epilogue bias)."""
    xc = x.astype(compute_dtype)
    h = jnp.einsum("bsd,df->bsf", xc, w1.astype(compute_dtype),
                   preferred_element_type=jnp.float32).astype(compute_dtype)
    h = jnp.maximum(h + b1.astype(compute_dtype), 0.0)
    y = jnp.einsum("bsf,fd->bsd", h, w2.astype(compute_dtype),
                   preferred_element_type=jnp.float32)
    return (y + b2.astype(jnp.float32)).astype(x.dtype)


if __name__ == "__main__":
    batch, seq, d_model, d_ff = 2, 8, 32, 64

    key = jax.random.PRNGKey(0)
    kx, k1, k2, k3, k4 = jax.random.split(key, 5)

    x = jax.random.normal(kx, (batch, seq, d_model), dtype=jnp.float32)
    # deterministic "kaiming-ish" init, shapes from the module __init__
    w1 = jax.random.normal(k1, (d_model, d_ff), dtype=jnp.float32) * (1.0 / d_model ** 0.5)
    b1 = jax.random.normal(k2, (d_ff,), dtype=jnp.float32) * 0.01
    w2 = jax.random.normal(k3, (d_ff, d_model), dtype=jnp.float32) * (1.0 / d_ff ** 0.5)
    b2 = jax.random.normal(k4, (d_model,), dtype=jnp.float32) * 0.01

    # One-time weight preparation (pad + cast), hoisted out of the call path.
    params = prepare_ffn_params(w1, b1, w2, b2)
    jax.block_until_ready(params["w1"])

    y = feedforward(x, params)
    jax.block_until_ready(y)

    y_ref = feedforward_ref(x, w1, b1, w2, b2)
    assert y.shape == (batch, seq, d_model)
    assert jnp.allclose(y, y_ref, atol=1e-2, rtol=1e-2), "mismatch vs reference"

    print("KERNEL_OK")
</pallas_src>

<mosaic_0001>
module attributes {stable_mosaic.version = 11 : i64} {
  func.func @ffn_kernel(%arg0: i32, %arg1: i32, %arg2: memref<16x128xbf16, #tpu.memory_space<vmem>>, %arg3: memref<128x128xbf16, #tpu.memory_space<vmem>>, %arg4: memref<1x128xbf16, #tpu.memory_space<vmem>>, %arg5: memref<128x128xbf16, #tpu.memory_space<vmem>>, %arg6: memref<1x128xf32, #tpu.memory_space<vmem>>, %arg7: memref<16x128xf32, #tpu.memory_space<vmem>>, %arg8: memref<16x128xf32, #tpu.memory_space<vmem>>) attributes {dimension_semantics = [#tpu.dimension_semantics<parallel>, #tpu.dimension_semantics<arbitrary>], iteration_bounds = array<i64: 1, 1>, scalar_prefetch = 0 : i64, scratch_operands = 1 : i64, tpu.core_type = #tpu.core_type<tc>, window_params = [{transform_indices = @transform_0, window_bounds = array<i64: 16, 128>}, {transform_indices = @transform_1, window_bounds = array<i64: 128, 128>}, {transform_indices = @transform_2, window_bounds = array<i64: 1, 128>}, {transform_indices = @transform_3, window_bounds = array<i64: 128, 128>}, {pipeline_mode = #tpu.pipeline_mode<synchronous>, transform_indices = @transform_4, window_bounds = array<i64: 1, 128>}, {transform_indices = @transform_5, window_bounds = array<i64: 16, 128>}]} {
    %c0_i32 = arith.constant 0 : i32
    %0 = arith.cmpi eq, %arg1, %c0_i32 : i32
    %1 = arith.extui %0 : i1 to i32
    %c0_i32_0 = arith.constant 0 : i32
    %2 = arith.cmpi ne, %1, %c0_i32_0 : i32
    scf.if %2 {
      %cst_16 = arith.constant 0.000000e+00 : f32
      %20 = vector.broadcast %cst_16 : f32 to vector<16x128xf32>
      %c0_17 = arith.constant 0 : index
      %c0_18 = arith.constant 0 : index
      %21 = vector.load %arg8[%c0_17, %c0_18] : memref<16x128xf32, #tpu.memory_space<vmem>>, vector<16x128xf32>
      tpu.vector_store %arg8[%c0_17, %c0_18], %20 {strides = array<i32>} : memref<16x128xf32, #tpu.memory_space<vmem>>, vector<16x128xf32>,
    } else {
    }
    %c0 = arith.constant 0 : index
    %c0_1 = arith.constant 0 : index
    %3 = vector.load %arg2[%c0, %c0_1] : memref<16x128xbf16, #tpu.memory_space<vmem>>, vector<16x128xbf16>
    %c0_2 = arith.constant 0 : index
    %c0_3 = arith.constant 0 : index
    %4 = vector.load %arg3[%c0_2, %c0_3] : memref<128x128xbf16, #tpu.memory_space<vmem>>, vector<128x128xbf16>
    %cst = arith.constant dense<0.000000e+00> : vector<16x128xf32>
    %5 = tpu.matmul %3, %4, %cst {dimension_numbers = #tpu.dot_dimension_numbers<[1], [0], [0], [1], [0, 0, 1, 1], [], []>} : vector<16x128xbf16>, vector<128x128xbf16>, vector<16x128xf32> -> vector<16x128xf32>
    %6 = arith.truncf %5 : vector<16x128xf32> to vector<16x128xbf16>
    %c0_4 = arith.constant 0 : index
    %c0_5 = arith.constant 0 : index
    %7 = vector.load %arg4[%c0_4, %c0_5] : memref<1x128xbf16, #tpu.memory_space<vmem>>, vector<1x128xbf16>
    %8 = vector.broadcast %7 : vector<1x128xbf16> to vector<16x128xbf16>
    %9 = arith.addf %6, %8 : vector<16x128xbf16>
    %cst_6 = arith.constant 0.000000e+00 : bf16
    %10 = vector.broadcast %cst_6 : bf16 to vector<16x128xbf16>
    %11 = arith.maximumf %9, %10 : vector<16x128xbf16>
    %c0_7 = arith.constant 0 : index
    %c0_8 = arith.constant 0 : index
    %12 = vector.load %arg8[%c0_7, %c0_8] : memref<16x128xf32, #tpu.memory_space<vmem>>, vector<16x128xf32>
    %c0_9 = arith.constant 0 : index
    %c0_10 = arith.constant 0 : index
    %13 = vector.load %arg5[%c0_9, %c0_10] : memref<128x128xbf16, #tpu.memory_space<vmem>>, vector<128x128xbf16>
    %cst_11 = arith.constant dense<0.000000e+00> : vector<16x128xf32>
    %14 = tpu.matmul %11, %13, %cst_11 {dimension_numbers = #tpu.dot_dimension_numbers<[1], [0], [0], [1], [0, 0, 1, 1], [], []>} : vector<16x128xbf16>, vector<128x128xbf16>, vector<16x128xf32> -> vector<16x128xf32>
    %15 = arith.addf %12, %14 : vector<16x128xf32>
    %c0_12 = arith.constant 0 : index
    %c0_13 = arith.constant 0 : index
    %16 = vector.load %arg8[%c0_12, %c0_13] : memref<16x128xf32, #tpu.memory_space<vmem>>, vector<16x128xf32>
    tpu.vector_store %arg8[%c0_12, %c0_13], %15 {strides = array<i32>} : memref<16x128xf32, #tpu.memory_space<vmem>>, vector<16x128xf32>,
    %c0_i32_14 = arith.constant 0 : i32
    %17 = arith.cmpi eq, %arg1, %c0_i32_14 : i32
    %18 = arith.extui %17 : i1 to i32
    %c0_i32_15 = arith.constant 0 : i32
    %19 = arith.cmpi ne, %18, %c0_i32_15 : i32
    scf.if %19 {
      %c0_16 = arith.constant 0 : index
      %c0_17 = arith.constant 0 : index
      %20 = vector.load %arg8[%c0_16, %c0_17] : memref<16x128xf32, #tpu.memory_space<vmem>>, vector<16x128xf32>
      %c0_18 = arith.constant 0 : index
      %c0_19 = arith.constant 0 : index
      %21 = vector.load %arg6[%c0_18, %c0_19] : memref<1x128xf32, #tpu.memory_space<vmem>>, vector<1x128xf32>
      %22 = vector.broadcast %21 : vector<1x128xf32> to vector<16x128xf32>
      %23 = arith.addf %20, %22 : vector<16x128xf32>
      %c0_20 = arith.constant 0 : index
      %c0_21 = arith.constant 0 : index
      %24 = vector.load %arg7[%c0_20, %c0_21] : memref<16x128xf32, #tpu.memory_space<vmem>>, vector<16x128xf32>
      tpu.vector_store %arg7[%c0_20, %c0_21], %23 {strides = array<i32>} : memref<16x128xf32, #tpu.memory_space<vmem>>, vector<16x128xf32>,
    } else {
    }
    return
  }
  func.func @transform_0(%arg0: i32, %arg1: i32) -> (i32, i32) {
    %c0_i32 = arith.constant 0 : i32
    %c0_i32_0 = arith.constant 0 : i32
    return %arg0, %c0_i32 : i32, i32
  }
  func.func @transform_1(%arg0: i32, %arg1: i32) -> (i32, i32) {
    %c0_i32 = arith.constant 0 : i32
    %c0_i32_0 = arith.constant 0 : i32
    return %c0_i32, %arg1 : i32, i32
  }
  func.func @transform_2(%arg0: i32, %arg1: i32) -> (i32, i32) {
    %c0_i32 = arith.constant 0 : i32
    %c0_i32_0 = arith.constant 0 : i32
    return %c0_i32, %arg1 : i32, i32
  }
  func.func @transform_3(%arg0: i32, %arg1: i32) -> (i32, i32) {
    %c0_i32 = arith.constant 0 : i32
    %c0_i32_0 = arith.constant 0 : i32
    return %arg1, %c0_i32 : i32, i32
  }
  func.func @transform_4(%arg0: i32, %arg1: i32) -> (i32, i32) {
    %c0_i32 = arith.constant 0 : i32
    %c0_i32_0 = arith.constant 0 : i32
    %c0_i32_1 = arith.constant 0 : i32
    return %c0_i32, %c0_i32_0 : i32, i32
  }
  func.func @transform_5(%arg0: i32, %arg1: i32) -> (i32, i32) {
    %c0_i32 = arith.constant 0 : i32
    %c0_i32_0 = arith.constant 0 : i32
    return %arg0, %c0_i32 : i32, i32
  }
}

</mosaic_0001>

<bundles_post_ra>
// kernel: tpu_custom_call.1
= control target key start
LH: loop header
LB: loop body
LE: loop exit
PB: predicated region body
PF: predicated region fallthrough
CT: control target
= control target key end

     0   :  { %10 = vsyncpa [#allocation4], 0  ;;  %s548_s0 = inlined_call_operand.hbm [shape: bf16[16,128], index: 0, kind: input, shape index: {}]   ;;  %s549_s1 = inlined_call_operand.hbm [shape: bf16[128,128], index: 1, kind: input, shape index: {}]   ;;  %s550_s2 = inlined_call_operand.vmem [shape: bf16[1,128], index: 2, kind: input, shape index: {}]   ;;  %s551_s3 = inlined_call_operand.hbm [shape: bf16[128,128], index: 3, kind: input, shape index: {}]   ;;  %s552_s4 = inlined_call_operand.vmem [shape: f32[1,128], index: 4, kind: input, shape index: {}]   ;;  %s553_s5 = inlined_call_operand.hbm [shape: f32[16,128], index: 5, kind: output, shape index: {}]  }
   0x1   :  { %11 = vsyncpa [#allocation7], 0 }
   0x2   :  { %12 = vsyncpa [#allocation5], 0  ;;  %s30_s20 = sshll.u32 %s549_s1, 4  ;;  %s492_s21 = smov [#allocation6]   ;;  %s31_s20 = int_to_ptr.hbm [resolvable:$true] %s30_s20 }
   0x3   :  { %s32_s22 = sshll.u32 %s492_s21, 4  ;;  %s17_s25 = sshll.u32 %s548_s0, 4  ;;  %s33_s22 = int_to_ptr.vmem [resolvable:$true] %s32_s22  ;;  %s18_s25 = int_to_ptr.hbm [resolvable:$true] %s17_s25 }
   0x4   :  { %s493_s26 = smov 64   ;;  %s494_s27 = smov 4  }
   0x5   :  { %38 = dma.hbm_to_vmem [thread:$0]  %s31_s20, 1024, %s33_s22, [#allocation7], %s493_s26, %s493_s26, %s494_s27  }
   0x6   :  { %s495_s28 = smov [#allocation3]   ;;  %s45_s7 = sshll.u32 %s551_s3, 4  ;;  %s46_s7 = int_to_ptr.hbm [resolvable:$true] %s45_s7 }
   0x7   :  { %s19_s29 = sshll.u32 %s495_s28, 4  ;;  %s496_s1 = smov [#allocation8]   ;;  %s20_s29 = int_to_ptr.vmem [resolvable:$true] %s19_s29 }
   0x8   :  { %25 = dma.hbm_to_vmem [thread:$0]  %s18_s25, 128, %s20_s29, [#allocation4], %s493_s26, %s493_s26, %s494_s27  }
   0x9   :  { %s47_s8 = sshll.u32 %s496_s1, 4  ;;  %s48_s8 = int_to_ptr.vmem [resolvable:$true] %s47_s8 }
   0xa   :  { %53 = dma.hbm_to_vmem [thread:$0]  %s46_s7, 1024, %s48_s8, [#allocation7], %s493_s26, %s493_s26, %s494_s27  }
   0xb   :  { %486 = dma.done.wait [#allocation4], 128  }
   0xc   :  { %487 = vsyncadd [#allocation4], 4294967168 }
   0xd   :  { %488 = dma.done.wait [#allocation7], 2048  }
   0xe   :  { %489 = vsyncadd [#allocation7], 4294965248  ;;  %v372_v0 = vld [vmem:[#allocation6 + $0x38] sm:$0xff]  ;;  %v371_v1 = vld [vmem:[#allocation6 + $0x30] sm:$0xff]  ;;  %s282_s14 = sshll.u32 %s553_s5, 4  ;;  %s498_s15 = smov 128   ;;  %s283_s14 = int_to_ptr.hbm [resolvable:$true] %s282_s14 }
   0xf   :  { %146 = vmatpush.bf16.msra.mxu0 %v372_v0  ;;  %v380_v2 = vld [vmem:[#allocation8 + $0x38] sm:$0xff]  ;;  %v379_v3 = vld [vmem:[#allocation8 + $0x30] sm:$0xff]  ;;  %v370_v4 = vld [vmem:[#allocation6 + $0x28] sm:$0xff]  ;;  %s499_s16 = smov 8  }
  0x10   :  { %245 = vmatpush.bf16.msra.mxu1 %v380_v2  ;;  %v378_v5 = vld [vmem:[#allocation8 + $0x28] sm:$0xff]  ;;  %v369_v6 = vld [vmem:[#allocation6 + $0x20] sm:$0xff]  ;;  %v368_v7 = vld [vmem:[#allocation6 + $0x18] sm:$0xff] }
  0x11   :  { %v367_v8 = vld [vmem:[#allocation6 + $0x10] sm:$0xff]  ;;  %v366_v9 = vld [vmem:[#allocation6 + $0x8] sm:$0xff]  ;;  %v365_v10 = vld [vmem:[#allocation6] sm:$0xff] }
  0x12   :  { %v364_v11 = vld [vmem:[#allocation3] sm:$0xff]  ;;  %v377_v12 = vld [vmem:[#allocation8 + $0x20] sm:$0xff]  ;;  %v375_v14 = vld [vmem:[#allocation8 + $0x10] sm:$0xff] }
  0x13   :  { %147 = vmatpush.bf16.msra.mxu0 %v371_v1  ;;  %v376_v13 = vld [vmem:[#allocation8 + $0x18] sm:$0xff]  ;;  %v374_v15 = vld [vmem:[#allocation8 + $0x8] sm:$0xff]  ;;  %v373_v16 = vld [vmem:[#allocation8] sm:$0xff] }
  0x14   :  { %246 = vmatpush.bf16.msra.mxu1 %v379_v3  ;;  %v162_v17 = vld [vmem:[%s550_s2] sm:$0x1]  ;;  %s497_s2 = smov [#allocation9]  }
  0x15   :  { %v164_v18 = vpack.i.b16 %v162_v17, %v162_v17  ;;  %v389_v32 = vld [vmem:[%s552_s4] ss:$0 sm:$0xff]  ;;  %s280_s11 = sshll.u32 %s497_s2, 4  ;;  %s281_s11 = int_to_ptr.vmem [resolvable:$true] %s280_s11 }
  0x17   :  { %148 = vmatpush.bf16.msra.mxu0 %v370_v4  ;;  %v166_v21 = vperm.slane %v164_v18, 0 }
  0x18   :  { %247 = vmatpush.bf16.msra.mxu1 %v378_v5 }
  0x19   :  { %v169_v23 = vunpack.c.l.bf16 %v166_v21 }
  0x1b   :  { %149 = vmatpush.bf16.msra.mxu0 %v369_v6 }
  0x1c   :  { %248 = vmatpush.bf16.msra.mxu1 %v377_v12 }
  0x1f   :  { %150 = vmatpush.bf16.msra.mxu0 %v368_v7 }
  0x20   :  { %249 = vmatpush.bf16.msra.mxu1 %v376_v13 }
  0x23   :  { %151 = vmatpush.bf16.msra.mxu0 %v367_v8 }
  0x24   :  { %250 = vmatpush.bf16.msra.mxu1 %v375_v14 }
  0x27   :  { %152 = vmatpush.bf16.msra.mxu0 %v366_v9 }
  0x28   :  { %251 = vmatpush.bf16.msra.mxu1 %v374_v15 }
  0x2b   :  { %153 = vmatpush.bf16.msra.mxu0 %v365_v10 }
  0x2c   :  { %252 = vmatpush.bf16.msra.mxu1 %v373_v16 }
  0x2e   :  { %154 = vmatmul.bf16.vlgmr.msra.gmra.mxu0 %v364_v11 }
  0xab   :  { %v155_v19 = vpop.f32.mrf.mxu0 }
  0xac   :  { %v160_v20 = vpack.c.bf16 %v155_v19, %v155_v19 }
  0xae   :  { %v167_v22 = vunpack.c.l.bf16 %v160_v20 }
  0xb0   :  { %v170_v26 = vadd.f32 %v169_v23, %v167_v22 }
  0xb2   :  { %v176_v30 = vmax.f32 %v170_v26, 0.0 }
  0xb3   :  { %v157_v24 = vpop.f32.mrf.mxu0 }
  0xb4   :  { %v161_v25 = vpack.c.bf16 %v157_v24, %v157_v24 }
  0xb6   :  { %v168_v27 = vunpack.c.l.bf16 %v161_v25 }
  0xb8   :  { %v171_v28 = vadd.f32 %v169_v23, %v168_v27 }
  0xba   :  { %v177_v29 = vmax.f32 %v171_v28, 0.0 }
  0xbc   :  { %v178_v31 = vpack.c.bf16 %v177_v29, %v176_v30 }
  0xbe   :  { %253 = vmatmul.bf16.vlgmr.msra.gmra.mxu1 %v178_v31 }
 0x13b   :  { %v254_v33 = vpop.f32.mrf.mxu1 }
 0x13c   :  { %v272_v34 = vadd.f32 %v389_v32, %v254_v33 }
 0x13e   :  { %274 = vst [vmem:[#allocation9] sm:$0xff] %v272_v34 }
 0x143   :  { %v256_v35 = vpop.f32.mrf.mxu1 }
 0x144   :  { %v273_v36 = vadd.f32 %v389_v32, %v256_v35 }
 0x146   :  { %275 = vst [vmem:[#allocation9 + $0x8] sm:$0xff] %v273_v36 }
 0x147   :  { %288 = dma.vmem_to_hbm [thread:$0]  %s281_s11, 256, %s283_s14, [#allocation5], %s498_s15, %s498_s15, %s499_s16  }
 0x148   :  { %490 = dma.done.wait [#allocation5], 256  }
 0x149   :  { %491 = vsyncadd [#allocation5], 4294967040 }
 0x14a   :  { %293 = vsyncpa [#allocation4], 1 }
 0x14b   :  { %294 = vsyncpa [#allocation7], 1 }
 0x14c   :  { %295 = vsyncpa [#allocation5], 1 }

</bundles_post_ra>
